<compile_context>
chip_gen: v6e
topology: v6e:2x2x1
jax: 0.10.0
libtpu: 0.0.40
codegen_flags: <defaults>
</compile_context>

<pallas_src>
import functools

import jax
import jax.numpy as jnp
from jax.experimental import pallas as pl
from jax.experimental.pallas import tpu as pltpu


# ---------------------------------------------------------------------------
# One-time parameter preparation (off the per-call hot path).
# ---------------------------------------------------------------------------
def _banded_conv_weight(w_dydx_io, win, wout, C, col_scale=None, halo_zero=False):
    """Fold a 3x3 conv into a K-stacked banded matmul weight for width-folded
    activations.

    w_dydx_io : (3, 3, Cin, Cout) f32, w[dy, dx, cin, cout]
    returns   : (3*win*C, wout*C) f32 with the dy taps stacked along K in the
                same order as the activation lane-concat
                  a = concat(x[0:..], x[1:..], x[2:..], axis=-1):
                T[dy*win*C + (j+dx)*C + cin, j*C + cout] = w[dy, dx, cin, cout]
    col_scale : optional per-output-channel BN scale folded into the columns.
    halo_zero : zero the rows reading width-groups 0 / win-1 (conv2's left /
                right zero padding) so no lane mask is needed in-kernel.
    """
    p = jnp.arange(win)[:, None]       # folded input-width index
    j = jnp.arange(wout)[None, :]      # folded output-width index
    dx = p - j
    valid = (dx >= 0) & (dx < 3)
    dxc = jnp.clip(dx, 0, 2)
    mats = []
    for dy in range(3):
        blocks = jnp.where(valid[:, :, None, None], w_dydx_io[dy][dxc], 0.0)
        mats.append(jnp.transpose(blocks, (0, 2, 1, 3)).reshape(win * C, wout * C))
    t = jnp.concatenate(mats, axis=0)                       # (3*win*C, wout*C)
    if halo_zero:
        p_all = jnp.tile(jnp.repeat(jnp.arange(win), C), 3)
        keep = ((p_all >= 1) & (p_all <= win - 2)).astype(t.dtype)
        t = t * keep[:, None]
    if col_scale is not None:
        t = t * jnp.tile(col_scale, wout)[None, :]
    return t


def prepare_simple_block(params, W, eps=1e-5):
    """Params-only prep: BN-scaled banded bf16 weights + folded f32 biases."""
    (w1, b1, g1, be1, rm1, rv1, w2, b2, g2, be2, rm2, rv2) = params
    C = w1.shape[0]

    # Fold conv bias + eval-mode BN into per-channel scale / bias.
    s1 = g1 / jnp.sqrt(rv1 + eps)
    bias1 = be1 + s1 * (b1 - rm1)
    s2 = g2 / jnp.sqrt(rv2 + eps)
    bias2 = be2 + s2 * (b2 - rm2)

    # PyTorch (Cout, Cin, 3, 3) -> (dy, dx, Cin, Cout).
    w1k = jnp.transpose(w1, (2, 3, 1, 0)).astype(jnp.float32)
    w2k = jnp.transpose(w2, (2, 3, 1, 0)).astype(jnp.float32)

    # Scales folded in f32, single bf16 quantization afterwards.
    t1 = _banded_conv_weight(w1k, W + 4, W + 2, C,
                             col_scale=s1).astype(jnp.bfloat16)
    t2 = _banded_conv_weight(w2k, W + 2, W, C, col_scale=s2,
                             halo_zero=True).astype(jnp.bfloat16)

    b1f = jnp.tile(bias1, W + 2)[None, :].astype(jnp.float32)   # (1, (W+2)*C)
    b2f = jnp.tile(bias2, W)[None, :].astype(jnp.float32)       # (1, W*C)
    return t1, t2, b1f, b2f


# ---------------------------------------------------------------------------
# Kernel.
# ---------------------------------------------------------------------------
def _make_kernel(Nb, H, W, C, fold):
    WC2 = (W + 2) * C
    WC = W * C
    Hf = H // fold

    def kernel(x_ref, w1_ref, w2_ref, b1_ref, b2_ref, out_ref):
        # x_ref : (Nb, H+4, (W+4)*C) f32   image padded by 2, width+chan folded
        # w1_ref: (3*(W+4)*C, (W+2)*C) bf16  K-stacked banded conv1 (BN-scaled)
        # w2_ref: (3*(W+2)*C,  W*C)    bf16  K-stacked banded conv2 (BN-scaled,
        #                                    lane-halo rows zeroed)
        # b*_ref: (1,(W+2)*C) / (1,W*C) f32  folded conv+BN biases
        # out_ref: (Nb, H/fold, fold*W*C) f32  lane-dense output slab
        w1 = w1_ref[...]
        w2 = w2_ref[...]
        b1 = b1_ref[...]
        b2 = b2_ref[...]

        # conv2's top/bottom zero-padding rows of the extended conv1 output.
        # (The lane halo is already folded into w2's zeroed rows.)
        row = jax.lax.broadcasted_iota(jnp.int32, (H + 2, WC2), 0)
        interior = (row >= 1) & (row <= H)

        # Images inside a block are unrolled rather than re-stacked into one
        # M = Nb*(H+2) operand: the sublane restack is a relayout of the whole
        # operand and costs roughly what the saved M-padding rows would buy,
        # while the real win (one grid step instead of Nb) is captured here.
        for i in range(Nb):
            xi = x_ref[i]                               # (H+4, (W+4)*C) f32
            xb = xi.astype(jnp.bfloat16)                # cast once, then slice

            # conv1 (+bn1 scale): ONE MXU matmul, dy taps K-concatenated.
            a1 = jnp.concatenate([xb[0:H + 2], xb[1:H + 3], xb[2:H + 4]],
                                 axis=-1)               # (H+2, 3*(W+4)*C)
            acc1 = jnp.dot(a1, w1, preferred_element_type=jnp.float32)

            # bias + relu (f32 VPU), zero conv2's padding rows, cast once.
            c1 = jnp.maximum(acc1 + b1, 0.0)
            c1 = jnp.where(interior, c1, 0.0).astype(jnp.bfloat16)

            # conv2 (+bn2 scale): ONE MXU matmul.
            a2 = jnp.concatenate([c1[0:H], c1[1:H + 1], c1[2:H + 2]],
                                 axis=-1)               # (H, 3*(W+2)*C)
            acc2 = jnp.dot(a2, w2, preferred_element_type=jnp.float32)

            # bias + residual (interior of the padded f32 input) + relu.
            res = xi[2:H + 2, 2 * C:(W + 2) * C]        # (H, W*C) f32
            y = jnp.maximum(res + acc2 + b2, 0.0)       # (H, W*C)

            # Lane-dense fold: pack `fold` row-groups side by side so the
            # store is an unmasked 128-lane-multiple slab.
            if fold > 1:
                y = jnp.concatenate(
                    [y[r * Hf:(r + 1) * Hf] for r in range(fold)], axis=-1)
            out_ref[i] = y                              # (H/fold, fold*W*C)

    return kernel


# ---------------------------------------------------------------------------
# Wrapper.
# ---------------------------------------------------------------------------
def _row_fold(H, WC):
    """Smallest row-group size f (dividing H) making f*WC a multiple of 128."""
    if WC % 128 == 0:
        return 1
    for f in range(2, H + 1):
        if H % f == 0 and (f * WC) % 128 == 0:
            return f
    return 1


def _default_images_per_block(N):
    """Single-TC chips (v5e/v6e): batch all images into one grid step.
    Multi-core chips (v7x's 2 TCs, megacore v2-v4/v5p): one image per grid
    step so dimension_semantics=("parallel",) spreads images across cores."""
    try:
        kind = jax.devices()[0].device_kind.lower()
    except Exception:
        kind = ""
    multi_core = any(t in kind for t in ("v7", "v5p", "v4", "v3", "v2"))
    if multi_core and N > 1:
        return 1
    return max(N, 1)


@functools.partial(jax.jit, static_argnums=(5,))
def _forward_impl(x_nchw, t1, t2, b1f, b2f, images_per_block):
    N, C, H, W = x_nchw.shape
    Nb = images_per_block
    WC4 = (W + 4) * C
    WC2 = (W + 2) * C
    WC = W * C
    fold = _row_fold(H, WC)
    Hf = H // fold

    # NCHW -> NHWC, pad by 2 (covers both convs), fold width+channels into the
    # lane dim.  f32 is kept so the residual add is exact.
    x = jnp.transpose(x_nchw, (0, 2, 3, 1)).astype(jnp.float32)
    xf = jnp.pad(x, ((0, 0), (2, 2), (2, 2), (0, 0))).reshape(N, H + 4, WC4)

    kernel = _make_kernel(Nb, H, W, C, fold)

    out_folded = pl.pallas_call(
        kernel,
        out_shape=jax.ShapeDtypeStruct((N, Hf, fold * WC), jnp.float32),
        grid_spec=pltpu.PrefetchScalarGridSpec(
            num_scalar_prefetch=0,
            grid=(N // Nb,),
            in_specs=[
                pl.BlockSpec((Nb, H + 4, WC4), lambda g: (g, 0, 0)),
                pl.BlockSpec((3 * WC4, WC2), lambda g: (0, 0)),
                pl.BlockSpec((3 * WC2, WC), lambda g: (0, 0)),
                pl.BlockSpec((1, WC2), lambda g: (0, 0)),
                pl.BlockSpec((1, WC), lambda g: (0, 0)),
            ],
            out_specs=pl.BlockSpec((Nb, Hf, fold * WC), lambda g: (g, 0, 0)),
        ),
        compiler_params=pltpu.CompilerParams(
            dimension_semantics=("parallel",),
        ),
    )(xf, t1, t2, b1f, b2f)

    # (N, H/fold, fold*W*C) -> NCHW.  Pure layout; row-major contiguous.
    out = out_folded.reshape(N, Hf, fold, W, C)
    return jnp.transpose(out, (0, 4, 2, 1, 3)).reshape(N, C, H, W)


def simple_block_forward(x_nchw, prepared, images_per_block=None):
    t1, t2, b1f, b2f = prepared
    N = x_nchw.shape[0]
    if images_per_block is None:
        images_per_block = _default_images_per_block(N)
    if N % images_per_block != 0:
        images_per_block = 1
    return _forward_impl(x_nchw, t1, t2, b1f, b2f, images_per_block)


# ---------------------------------------------------------------------------
# Pure-JAX reference + test harness.
# ---------------------------------------------------------------------------
def ref_forward(x_nchw, params, eps=1e-5):
    """Pure-JAX f32 reference of SimpleBlock.forward (eval-mode BN)."""
    (w1, b1, g1, be1, rm1, rv1,
     w2, b2, g2, be2, rm2, rv2) = params

    def conv(x, w, b):
        y = jax.lax.conv_general_dilated(
            x, w, window_strides=(1, 1), padding=((1, 1), (1, 1)),
            dimension_numbers=("NCHW", "OIHW", "NCHW"))
        return y + b[None, :, None, None]

    def bn(x, g, be, rm, rv):
        return (g[None, :, None, None] * (x - rm[None, :, None, None])
                / jnp.sqrt(rv[None, :, None, None] + eps)
                + be[None, :, None, None])

    c1 = jax.nn.relu(bn(conv(x_nchw, w1, b1), g1, be1, rm1, rv1))
    c2 = bn(conv(c1, w2, b2), g2, be2, rm2, rv2)
    return jax.nn.relu(x_nchw + c2)


def make_params(key, channels):
    ks = jax.random.split(key, 12)
    C = channels
    w1 = 0.1 * jax.random.normal(ks[0], (C, C, 3, 3), jnp.float32)
    b1 = 0.1 * jax.random.normal(ks[1], (C,), jnp.float32)
    g1 = 1.0 + 0.1 * jax.random.normal(ks[2], (C,), jnp.float32)
    be1 = 0.1 * jax.random.normal(ks[3], (C,), jnp.float32)
    rm1 = 0.1 * jax.random.normal(ks[4], (C,), jnp.float32)
    rv1 = 0.5 + jnp.abs(jax.random.normal(ks[5], (C,), jnp.float32))
    w2 = 0.1 * jax.random.normal(ks[6], (C, C, 3, 3), jnp.float32)
    b2 = 0.1 * jax.random.normal(ks[7], (C,), jnp.float32)
    g2 = 1.0 + 0.1 * jax.random.normal(ks[8], (C,), jnp.float32)
    be2 = 0.1 * jax.random.normal(ks[9], (C,), jnp.float32)
    rm2 = 0.1 * jax.random.normal(ks[10], (C,), jnp.float32)
    rv2 = 0.5 + jnp.abs(jax.random.normal(ks[11], (C,), jnp.float32))
    return (w1, b1, g1, be1, rm1, rv1, w2, b2, g2, be2, rm2, rv2)


if __name__ == "__main__":
    N, C, H, W = 2, 4, 16, 16
    key = jax.random.PRNGKey(0)
    kp, kx = jax.random.split(key)
    params = make_params(kp, C)
    x = jax.random.normal(kx, (N, C, H, W), jnp.float32)

    # One-time, params-only prep (hoisted off the per-call hot path).
    prepared = prepare_simple_block(params, W)

    out = simple_block_forward(x, prepared)
    out = jax.block_until_ready(out)

    ref = ref_forward(x, params)
    assert out.shape == (N, C, H, W)
    max_err = float(jnp.max(jnp.abs(out - ref)))
    # bf16 MXU operands with f32 accumulation -> loosened tolerance vs f32 ref.
    assert jnp.allclose(out, ref, atol=5e-2, rtol=5e-2), max_err

    print("KERNEL_OK")
</pallas_src>

<mosaic_0001>
module attributes {stable_mosaic.version = 11 : i64} {
  func.func @kernel(%arg0: i32, %arg1: memref<2x20x80xf32, #tpu.memory_space<vmem>>, %arg2: memref<240x72xbf16, #tpu.memory_space<vmem>>, %arg3: memref<216x64xbf16, #tpu.memory_space<vmem>>, %arg4: memref<1x72xf32, #tpu.memory_space<vmem>>, %arg5: memref<1x64xf32, #tpu.memory_space<vmem>>, %arg6: memref<2x8x128xf32, #tpu.memory_space<vmem>>) attributes {dimension_semantics = [#tpu.dimension_semantics<parallel>], iteration_bounds = array<i64: 1>, scalar_prefetch = 0 : i64, scratch_operands = 0 : i64, tpu.core_type = #tpu.core_type<tc>, window_params = [{transform_indices = @transform_0, window_bounds = array<i64: 2, 20, 80>}, {pipeline_mode = #tpu.pipeline_mode<synchronous>, transform_indices = @transform_1, window_bounds = array<i64: 240, 72>}, {pipeline_mode = #tpu.pipeline_mode<synchronous>, transform_indices = @transform_2, window_bounds = array<i64: 216, 64>}, {pipeline_mode = #tpu.pipeline_mode<synchronous>, transform_indices = @transform_3, window_bounds = array<i64: 1, 72>}, {pipeline_mode = #tpu.pipeline_mode<synchronous>, transform_indices = @transform_4, window_bounds = array<i64: 1, 64>}, {transform_indices = @transform_5, window_bounds = array<i64: 2, 8, 128>}]} {
    %c0 = arith.constant 0 : index
    %c0_0 = arith.constant 0 : index
    %0 = vector.load %arg2[%c0, %c0_0] : memref<240x72xbf16, #tpu.memory_space<vmem>>, vector<240x72xbf16>
    %c0_1 = arith.constant 0 : index
    %c0_2 = arith.constant 0 : index
    %1 = vector.load %arg3[%c0_1, %c0_2] : memref<216x64xbf16, #tpu.memory_space<vmem>>, vector<216x64xbf16>
    %c0_3 = arith.constant 0 : index
    %c0_4 = arith.constant 0 : index
    %2 = vector.load %arg4[%c0_3, %c0_4] : memref<1x72xf32, #tpu.memory_space<vmem>>, vector<1x72xf32>
    %c0_5 = arith.constant 0 : index
    %c0_6 = arith.constant 0 : index
    %3 = vector.load %arg5[%c0_5, %c0_6] : memref<1x64xf32, #tpu.memory_space<vmem>>, vector<1x64xf32>
    %4 = tpu.iota {dimensions = array<i32: 0>} : vector<18x72xi32>
    %c1_i32 = arith.constant 1 : i32
    %5 = vector.broadcast %c1_i32 : i32 to vector<18x72xi32>
    %6 = arith.cmpi sge, %4, %5 : vector<18x72xi32>
    %c16_i32 = arith.constant 16 : i32
    %7 = vector.broadcast %c16_i32 : i32 to vector<18x72xi32>
    %8 = arith.cmpi sle, %4, %7 : vector<18x72xi32>
    %9 = arith.andi %6, %8 : vector<18x72xi1>
    %c0_7 = arith.constant 0 : index
    %c0_8 = arith.constant 0 : index
    %c0_9 = arith.constant 0 : index
    %10 = vector.load %arg1[%c0_7, %c0_8, %c0_9] : memref<2x20x80xf32, #tpu.memory_space<vmem>>, vector<1x20x80xf32>
    %11 = vector.shape_cast %10 : vector<1x20x80xf32> to vector<20x80xf32>
    %12 = arith.truncf %11 : vector<20x80xf32> to vector<20x80xbf16>
    %13 = vector.extract_strided_slice %12 {offsets = [0, 0], sizes = [18, 80], strides = [1, 1]} : vector<20x80xbf16> to vector<18x80xbf16>
    %14 = vector.extract_strided_slice %12 {offsets = [1, 0], sizes = [18, 80], strides = [1, 1]} : vector<20x80xbf16> to vector<18x80xbf16>
    %15 = vector.extract_strided_slice %12 {offsets = [2, 0], sizes = [18, 80], strides = [1, 1]} : vector<20x80xbf16> to vector<18x80xbf16>
    %16 = tpu.concatenate %13, %14, %15 in 1 : vector<18x80xbf16>, vector<18x80xbf16>, vector<18x80xbf16> -> vector<18x240xbf16>
    %cst = arith.constant dense<0.000000e+00> : vector<18x72xf32>
    %17 = tpu.matmul %16, %0, %cst {dimension_numbers = #tpu.dot_dimension_numbers<[1], [0], [0], [1], [0, 0, 1, 1], [], []>} : vector<18x240xbf16>, vector<240x72xbf16>, vector<18x72xf32> -> vector<18x72xf32>
    %18 = vector.broadcast %2 : vector<1x72xf32> to vector<18x72xf32>
    %19 = arith.addf %17, %18 : vector<18x72xf32>
    %cst_10 = arith.constant 0.000000e+00 : f32
    %20 = vector.broadcast %cst_10 : f32 to vector<18x72xf32>
    %21 = arith.maximumf %19, %20 : vector<18x72xf32>
    %cst_11 = arith.constant 0.000000e+00 : f32
    %22 = vector.broadcast %cst_11 : f32 to vector<18x72xf32>
    %23 = arith.select %9, %21, %22 : vector<18x72xi1>, vector<18x72xf32>
    %24 = arith.truncf %23 : vector<18x72xf32> to vector<18x72xbf16>
    %25 = vector.extract_strided_slice %24 {offsets = [0, 0], sizes = [16, 72], strides = [1, 1]} : vector<18x72xbf16> to vector<16x72xbf16>
    %26 = vector.extract_strided_slice %24 {offsets = [1, 0], sizes = [16, 72], strides = [1, 1]} : vector<18x72xbf16> to vector<16x72xbf16>
    %27 = vector.extract_strided_slice %24 {offsets = [2, 0], sizes = [16, 72], strides = [1, 1]} : vector<18x72xbf16> to vector<16x72xbf16>
    %28 = tpu.concatenate %25, %26, %27 in 1 : vector<16x72xbf16>, vector<16x72xbf16>, vector<16x72xbf16> -> vector<16x216xbf16>
    %cst_12 = arith.constant dense<0.000000e+00> : vector<16x64xf32>
    %29 = tpu.matmul %28, %1, %cst_12 {dimension_numbers = #tpu.dot_dimension_numbers<[1], [0], [0], [1], [0, 0, 1, 1], [], []>} : vector<16x216xbf16>, vector<216x64xbf16>, vector<16x64xf32> -> vector<16x64xf32>
    %30 = vector.extract_strided_slice %11 {offsets = [2, 8], sizes = [16, 64], strides = [1, 1]} : vector<20x80xf32> to vector<16x64xf32>
    %31 = arith.addf %30, %29 : vector<16x64xf32>
    %32 = vector.broadcast %3 : vector<1x64xf32> to vector<16x64xf32>
    %33 = arith.addf %31, %32 : vector<16x64xf32>
    %cst_13 = arith.constant 0.000000e+00 : f32
    %34 = vector.broadcast %cst_13 : f32 to vector<16x64xf32>
    %35 = arith.maximumf %33, %34 : vector<16x64xf32>
    %36 = vector.extract_strided_slice %35 {offsets = [0, 0], sizes = [8, 64], strides = [1, 1]} : vector<16x64xf32> to vector<8x64xf32>
    %37 = vector.extract_strided_slice %35 {offsets = [8, 0], sizes = [8, 64], strides = [1, 1]} : vector<16x64xf32> to vector<8x64xf32>
    %38 = tpu.concatenate %36, %37 in 1 : vector<8x64xf32>, vector<8x64xf32> -> vector<8x128xf32>
    %c0_14 = arith.constant 0 : index
    %c0_15 = arith.constant 0 : index
    %c0_16 = arith.constant 0 : index
    %39 = vector.load %arg6[%c0_14, %c0_15, %c0_16] : memref<2x8x128xf32, #tpu.memory_space<vmem>>, vector<1x8x128xf32>
    %40 = vector.shape_cast %39 : vector<1x8x128xf32> to vector<8x128xf32>
    %41 = vector.shape_cast %38 : vector<8x128xf32> to vector<1x8x128xf32>
    tpu.vector_store %arg6[%c0_14, %c0_15, %c0_16], %41 {strides = array<i32>} : memref<2x8x128xf32, #tpu.memory_space<vmem>>, vector<1x8x128xf32>,
    %c1 = arith.constant 1 : index
    %c0_17 = arith.constant 0 : index
    %c0_18 = arith.constant 0 : index
    %42 = vector.load %arg1[%c1, %c0_17, %c0_18] : memref<2x20x80xf32, #tpu.memory_space<vmem>>, vector<1x20x80xf32>
    %43 = vector.shape_cast %42 : vector<1x20x80xf32> to vector<20x80xf32>
    %44 = arith.truncf %43 : vector<20x80xf32> to vector<20x80xbf16>
    %45 = vector.extract_strided_slice %44 {offsets = [0, 0], sizes = [18, 80], strides = [1, 1]} : vector<20x80xbf16> to vector<18x80xbf16>
    %46 = vector.extract_strided_slice %44 {offsets = [1, 0], sizes = [18, 80], strides = [1, 1]} : vector<20x80xbf16> to vector<18x80xbf16>
    %47 = vector.extract_strided_slice %44 {offsets = [2, 0], sizes = [18, 80], strides = [1, 1]} : vector<20x80xbf16> to vector<18x80xbf16>
    %48 = tpu.concatenate %45, %46, %47 in 1 : vector<18x80xbf16>, vector<18x80xbf16>, vector<18x80xbf16> -> vector<18x240xbf16>
    %cst_19 = arith.constant dense<0.000000e+00> : vector<18x72xf32>
    %49 = tpu.matmul %48, %0, %cst_19 {dimension_numbers = #tpu.dot_dimension_numbers<[1], [0], [0], [1], [0, 0, 1, 1], [], []>} : vector<18x240xbf16>, vector<240x72xbf16>, vector<18x72xf32> -> vector<18x72xf32>
    %50 = vector.broadcast %2 : vector<1x72xf32> to vector<18x72xf32>
    %51 = arith.addf %49, %50 : vector<18x72xf32>
    %cst_20 = arith.constant 0.000000e+00 : f32
    %52 = vector.broadcast %cst_20 : f32 to vector<18x72xf32>
    %53 = arith.maximumf %51, %52 : vector<18x72xf32>
    %cst_21 = arith.constant 0.000000e+00 : f32
    %54 = vector.broadcast %cst_21 : f32 to vector<18x72xf32>
    %55 = arith.select %9, %53, %54 : vector<18x72xi1>, vector<18x72xf32>
    %56 = arith.truncf %55 : vector<18x72xf32> to vector<18x72xbf16>
    %57 = vector.extract_strided_slice %56 {offsets = [0, 0], sizes = [16, 72], strides = [1, 1]} : vector<18x72xbf16> to vector<16x72xbf16>
    %58 = vector.extract_strided_slice %56 {offsets = [1, 0], sizes = [16, 72], strides = [1, 1]} : vector<18x72xbf16> to vector<16x72xbf16>
    %59 = vector.extract_strided_slice %56 {offsets = [2, 0], sizes = [16, 72], strides = [1, 1]} : vector<18x72xbf16> to vector<16x72xbf16>
    %60 = tpu.concatenate %57, %58, %59 in 1 : vector<16x72xbf16>, vector<16x72xbf16>, vector<16x72xbf16> -> vector<16x216xbf16>
    %cst_22 = arith.constant dense<0.000000e+00> : vector<16x64xf32>
    %61 = tpu.matmul %60, %1, %cst_22 {dimension_numbers = #tpu.dot_dimension_numbers<[1], [0], [0], [1], [0, 0, 1, 1], [], []>} : vector<16x216xbf16>, vector<216x64xbf16>, vector<16x64xf32> -> vector<16x64xf32>
    %62 = vector.extract_strided_slice %43 {offsets = [2, 8], sizes = [16, 64], strides = [1, 1]} : vector<20x80xf32> to vector<16x64xf32>
    %63 = arith.addf %62, %61 : vector<16x64xf32>
    %64 = vector.broadcast %3 : vector<1x64xf32> to vector<16x64xf32>
    %65 = arith.addf %63, %64 : vector<16x64xf32>
    %cst_23 = arith.constant 0.000000e+00 : f32
    %66 = vector.broadcast %cst_23 : f32 to vector<16x64xf32>
    %67 = arith.maximumf %65, %66 : vector<16x64xf32>
    %68 = vector.extract_strided_slice %67 {offsets = [0, 0], sizes = [8, 64], strides = [1, 1]} : vector<16x64xf32> to vector<8x64xf32>
    %69 = vector.extract_strided_slice %67 {offsets = [8, 0], sizes = [8, 64], strides = [1, 1]} : vector<16x64xf32> to vector<8x64xf32>
    %70 = tpu.concatenate %68, %69 in 1 : vector<8x64xf32>, vector<8x64xf32> -> vector<8x128xf32>
    %c1_24 = arith.constant 1 : index
    %c0_25 = arith.constant 0 : index
    %c0_26 = arith.constant 0 : index
    %71 = vector.load %arg6[%c1_24, %c0_25, %c0_26] : memref<2x8x128xf32, #tpu.memory_space<vmem>>, vector<1x8x128xf32>
    %72 = vector.shape_cast %71 : vector<1x8x128xf32> to vector<8x128xf32>
    %73 = vector.shape_cast %70 : vector<8x128xf32> to vector<1x8x128xf32>
    tpu.vector_store %arg6[%c1_24, %c0_25, %c0_26], %73 {strides = array<i32>} : memref<2x8x128xf32, #tpu.memory_space<vmem>>, vector<1x8x128xf32>,
    return
  }
  func.func @transform_0(%arg0: i32) -> (i32, i32, i32) {
    %c0_i32 = arith.constant 0 : i32
    %c0_i32_0 = arith.constant 0 : i32
    %c0_i32_1 = arith.constant 0 : i32
    return %arg0, %c0_i32, %c0_i32_0 : i32, i32, i32
  }
  func.func @transform_1(%arg0: i32) -> (i32, i32) {
    %c0_i32 = arith.constant 0 : i32
    %c0_i32_0 = arith.constant 0 : i32
    %c0_i32_1 = arith.constant 0 : i32
    return %c0_i32, %c0_i32_0 : i32, i32
  }
  func.func @transform_2(%arg0: i32) -> (i32, i32) {
    %c0_i32 = arith.constant 0 : i32
    %c0_i32_0 = arith.constant 0 : i32
    %c0_i32_1 = arith.constant 0 : i32
    return %c0_i32, %c0_i32_0 : i32, i32
  }
  func.func @transform_3(%arg0: i32) -> (i32, i32) {
    %c0_i32 = arith.constant 0 : i32
    %c0_i32_0 = arith.constant 0 : i32
    %c0_i32_1 = arith.constant 0 : i32
    return %c0_i32, %c0_i32_0 : i32, i32
  }
  func.func @transform_4(%arg0: i32) -> (i32, i32) {
    %c0_i32 = arith.constant 0 : i32
    %c0_i32_0 = arith.constant 0 : i32
    %c0_i32_1 = arith.constant 0 : i32
    return %c0_i32, %c0_i32_0 : i32, i32
  }
  func.func @transform_5(%arg0: i32) -> (i32, i32, i32) {
    %c0_i32 = arith.constant 0 : i32
    %c0_i32_0 = arith.constant 0 : i32
    %c0_i32_1 = arith.constant 0 : i32
    return %arg0, %c0_i32, %c0_i32_0 : i32, i32, i32
  }
}

</mosaic_0001>

<bundles_post_ra>
// kernel: _forward_impl.1
= control target key start
LH: loop header
LB: loop body
LE: loop exit
PB: predicated region body
PF: predicated region fallthrough
CT: control target
= control target key end

     0   :  { %v805_v3 = vmov 0   ;;  %vm98_vm0 = vsmask.f32 7424  ;;  %vm120_vm1 = vcmask 1046528   ;;  %s806_s30 = smov 80   ;;  %s807_s8 = smov 32   ;;  %v80_v55 = vlaneseq  ;;  %s1197_s0 = inlined_call_operand.vmem [shape: f32[2,20,80], index: 0, kind: input, shape index: {}]   ;;  %s1198_s1 = inlined_call_operand.vmem [shape: bf16[240,72], index: 1, kind: input, shape index: {}]   ;;  %s1199_s2 = inlined_call_operand.vmem [shape: bf16[216,64], index: 2, kind: input, shape index: {}]   ;;  %s1200_s3 = inlined_call_operand.vmem [shape: f32[1,72], index: 3, kind: input, shape index: {}]   ;;  %s1201_s4 = inlined_call_operand.vmem [shape: f32[1,64], index: 4, kind: input, shape index: {}]   ;;  %s1202_s5 = inlined_call_operand.vmem [shape: f32[2,8,128], index: 5, kind: output, shape index: {}]  }
   0x1   :  { %v846_v0 = vld [vmem:[%s1197_s0] sm:$0xff]  ;;  %v851_v1 = vld [vmem:[%s1197_s0 + $0x8] sm:$0xff]  ;;  %v856_v2 = vld [vmem:[%s1197_s0 + $0x10] sm:$0xf]  ;;  %241 = vmatprep.subr.bf16.mxu0 %v805_v3  ;;  %413 = vmatprep.subr.bf16.mxu1 %v805_v3  ;;  %vm135_vm2 = vcmask 261120   ;;  %vm236_vm3 = vcmask 916480  }
   0x2   :  { %v862_v4 = vpack.c.bf16 %v851_v1, %v846_v0  ;;  %v866_v5 = vpack.c.bf16 %v856_v2, %v856_v2  ;;  %v871_v6 = vld [vmem:[%s1198_s1 + $0x38] sm:$0xff]   ;;  %v876_v7 = vld [vmem:[%s1198_s1 + $0x30] sm:$0xff]   ;;  %v890_v18 = vld [vmem:[%s1198_s1 + $0x28] sm:$0xff]   ;;  %vm128_vm4 = vcmask 654336   ;;  %vm409_vm5 = vcmask 1043456   ;;  %s812_s19 = smov 56  }
   0x3   :  { %242 = vmatpush1.bf16.msra.mxu0 %v871_v6  ;;  %v901_v21 = vld [vmem:[%s1198_s1 + $0x20] sm:$0xff]   ;;  %v910_v22 = vld [vmem:[%s1198_s1 + $0x18] sm:$0xff]   ;;  %v917_v23 = vld [vmem:[%s1198_s1 + $0x10] sm:$0xff]   ;;  %v1063_v58 = vshrl.u32 %v80_v55, 7  ;;  %vm322_vm8 = vcmask 130048   ;;  %vm318_vm9 = vcmask 588800  }
   0x4   :  { %v100_v8 = vshrl.u32 %v862_v4, 16  ;;  %v102_v9 = vshll.u32 %v862_v4, 16  ;;  %v107_v10 = vshll.u32 %v866_v5, 16  ;;  %v111_v11 = vshrl.u32 %v866_v5, 16  ;;  %243 = vmatprep.subr.bf16.mxu0 %v805_v3  ;;  %v924_v24 = vld [vmem:[%s1198_s1 + $0x8] sm:$0xff]   ;;  %v931_v25 = vld [vmem:[%s1198_s1] sm:$0xff]  }
   0x5   :  { %v121_v14 = vrot.slane %v862_v4, 1  ;;  %v122_v17 = vrot.slane %v866_v5, 1  ;;  %v938_v26 = vld [vmem:[%s1198_s1 + $0x70] sm:$0xff]   ;;  %v945_v27 = vld [vmem:[%s1198_s1 + $0x68] sm:$0xff]   ;;  %v952_v28 = vld [vmem:[%s1198_s1 + $0x60] sm:$0xff]   ;;  %vm84_vm6 = vcmp.ge.s32.totalorder %v1063_v58, 1 }
   0x6   :  { %v104_v12 = vrot.slane %v102_v9, 1  ;;  %v109_v13 = vrot.slane %v107_v10, 1  ;;  %v959_v29 = vld [vmem:[%s1198_s1 + $0x58] sm:$0xff]   ;;  %v966_v30 = vld [vmem:[%s1198_s1 + $0x50] sm:$0xff]   ;;  %v973_v31 = vld [vmem:[%s1198_s1 + $0x48] sm:$0xff]   ;;  %v1082_v10 = vadd.s32 16, %v1063_v58 }
   0x7   :  { %244 = vmatpush1.bf16.msra.mxu0 %v876_v7  ;;  %v123_v20 = vsel %vm120_vm1, %v121_v14, %v122_v17  ;;  %v980_v32 = vld [vmem:[%s1198_s1 + $0x40] sm:$0xff]   ;;  %v791_v41 = vld [vmem:[%s1199_s2 + $0x38] sm:$0xff]   ;;  %v792_v42 = vld [vmem:[%s1199_s2 + $0x30] sm:$0xff]   ;;  %vm406_vm10 = vcmask 719872   ;;  %vm456_vm11 = vcmask 1041408   ;;  %vm501_vm12 = vcmask 523264  }
   0x8   :  { %v105_v15 = vor.u32 %v104_v12, %v100_v8  ;;  %v113_v16 = vor.u32 %v111_v11, %v109_v13  ;;  %245 = vmatprep.subr.bf16.mxu0 %v805_v3  ;;  %414 = vmatpush1.bf16.msra.mxu1 %v791_v41  ;;  %v793_v43 = vld [vmem:[%s1199_s2 + $0x28] sm:$0xff]   ;;  %v794_v44 = vld [vmem:[%s1199_s2 + $0x20] sm:$0xff]   ;;  %v795_v45 = vld [vmem:[%s1199_s2 + $0x18] sm:$0xff]   ;;  %vm89_vm7 = vcmp.le.s32.totalorder %v1082_v10, 16 }
   0x9   :  { %415 = vmatprep.subr.bf16.mxu1 %v805_v3  ;;  %v796_v46 = vld [vmem:[%s1199_s2 + $0x10] sm:$0xff]   ;;  %v797_v47 = vld [vmem:[%s1199_s2 + $0x8] sm:$0xff]   ;;  %v798_v48 = vld [vmem:[%s1199_s2] sm:$0xff]  }
   0xa   :  { %v110_v19 = vsel %vm98_vm0, %v105_v15, %v109_v13  ;;  %116 = vrot.lane.b32.xlu1 %v113_v16, %s806_s30  ;;  %v799_v49 = vld [vmem:[%s1199_s2 + $0x68] ss:$0 sps:$4 sm:$0xff]   ;;  %v800_v51 = vld [vmem:[%s1199_s2 + $0x60] sm:$0xff]   ;;  %v801_v52 = vld [vmem:[%s1199_s2 + $0x58] sm:$0xff]  }
   0xb   :  { %114 = vrot.lane.b32.xlu0 %v110_v19, %s806_s30  ;;  %246 = vmatpush1.bf16.msra.mxu0 %v890_v18  ;;  %v411_v50 = vsel %vm409_vm5, %v799_v49, 0  ;;  %v802_v53 = vld [vmem:[%s1199_s2 + $0x50] sm:$0xff]   ;;  %v803_v54 = vld [vmem:[%s1199_s2 + $0x48] sm:$0xff]   ;;  %v1061_v56 = vld [vmem:[%s1200_s3] ss:$0 sm:$0xff] }
   0xc   :  { %247 = vmatprep.subr.bf16.mxu0 %v805_v3  ;;  %416 = vmatpush1.bf16.msra.mxu1 %v792_v42  ;;  %v1069_v61 = vld [vmem:[%s1197_s0 + $0x18] sm:$0xff]  ;;  %v1074_v62 = vld [vmem:[%s1197_s0 + $0x20] sm:$0xff]  ;;  %v1087_v11 = vld [vmem:[%s1197_s0 + $0x28] sm:$0xf]  ;;  %s808_s0 = smov 16  }
   0xd   :  { %417 = vmatprep.subr.bf16.mxu1 %v805_v3  ;;  %v1091_v12 = vpack.c.bf16 %v1074_v62, %v1069_v61  ;;  %v1099_v19 = vpack.c.bf16 %v1087_v11, %v1087_v11 }
   0xe   :  { %126 = vrot.lane.b32.xlu1 %v122_v17, %s807_s8 }
   0xf   :  { %124 = vrot.lane.b32.xlu0 %v123_v20, %s807_s8  ;;  %248 = vmatpush1.bf16.msra.mxu0 %v901_v21 }
  0x10   :  { %249 = vmatprep.subr.bf16.mxu0 %v805_v3  ;;  %418 = vmatpush1.bf16.msra.mxu1 %v793_v43 }
  0x11   :  { %419 = vmatprep.subr.bf16.mxu1 %v805_v3 }
  0x13   :  { %250 = vmatpush1.bf16.msra.mxu0 %v910_v22 }
  0x14   :  { %251 = vmatprep.subr.bf16.mxu0 %v805_v3  ;;  %420 = vmatpush1.bf16.msra.mxu1 %v794_v44 }
  0x15   :  { %421 = vmatprep.subr.bf16.mxu1 %v805_v3 }
  0x17   :  { %252 = vmatpush1.bf16.msra.mxu0 %v917_v23 }
  0x18   :  { %253 = vmatprep.subr.bf16.mxu0 %v805_v3  ;;  %422 = vmatpush1.bf16.msra.mxu1 %v795_v45 }
  0x19   :  { %423 = vmatprep.subr.bf16.mxu1 %v805_v3 }
  0x1b   :  { %254 = vmatpush1.bf16.msra.mxu0 %v924_v24 }
  0x1c   :  { %255 = vmatprep.subr.bf16.mxu0 %v805_v3  ;;  %424 = vmatpush1.bf16.msra.mxu1 %v796_v46 }
  0x1d   :  { %425 = vmatprep.subr.bf16.mxu1 %v805_v3 }
  0x1f   :  { %256 = vmatpush1.bf16.msra.mxu0 %v931_v25 }
  0x20   :  { %259 = vmatprep.subr.bf16.mxu0 %v805_v3  ;;  %426 = vmatpush1.bf16.msra.mxu1 %v797_v47 }
  0x21   :  { %427 = vmatprep.subr.bf16.mxu1 %v805_v3 }
  0x23   :  { %260 = vmatpush2.bf16.msra.mxu0 %v938_v26 }
  0x24   :  { %261 = vmatprep.subr.bf16.mxu0 %v805_v3  ;;  %428 = vmatpush1.bf16.msra.mxu1 %v798_v48 }
  0x25   :  { %433 = vmatprep.subr.bf16.mxu1 %v805_v3 }
  0x27   :  { %262 = vmatpush2.bf16.msra.mxu0 %v945_v27 }
  0x28   :  { %263 = vmatprep.subr.bf16.mxu0 %v805_v3  ;;  %434 = vmatpush2.bf16.msra.mxu1 %v411_v50 }
  0x29   :  { %435 = vmatprep.subr.bf16.mxu1 %v805_v3 }
  0x2b   :  { %264 = vmatpush2.bf16.msra.mxu0 %v952_v28 }
  0x2c   :  { %265 = vmatprep.subr.bf16.mxu0 %v805_v3  ;;  %436 = vmatpush2.bf16.msra.mxu1 %v800_v51 }
  0x2d   :  { %437 = vmatprep.subr.bf16.mxu1 %v805_v3 }
  0x2f   :  { %266 = vmatpush2.bf16.msra.mxu0 %v959_v29 }
  0x30   :  { %267 = vmatprep.subr.bf16.mxu0 %v805_v3  ;;  %438 = vmatpush2.bf16.msra.mxu1 %v801_v52 }
  0x31   :  { %439 = vmatprep.subr.bf16.mxu1 %v805_v3 }
  0x33   :  { %268 = vmatpush2.bf16.msra.mxu0 %v966_v30 }
  0x34   :  { %269 = vmatprep.subr.bf16.mxu0 %v805_v3  ;;  %440 = vmatpush2.bf16.msra.mxu1 %v802_v53 }
  0x35   :  { %441 = vmatprep.subr.bf16.mxu1 %v805_v3 }
  0x37   :  { %270 = vmatpush2.bf16.msra.mxu0 %v973_v31 }
  0x38   :  { %271 = vmatprep.subr.bf16.mxu0 %v805_v3  ;;  %442 = vmatpush2.bf16.msra.mxu1 %v803_v54 }
  0x39   :  { %443 = vmatprep.subr.bf16.mxu1 %v805_v3 }
  0x3b   :  { %272 = vmatpush2.bf16.msra.mxu0 %v980_v32 }
  0x3c   :  { %638 = vmatprep.subr.bf16.mxu0 %v805_v3 }
  0x7c   :  { %v117_v33 = vpop.permute.xlu1 %116 }
  0x7d   :  { %v115_v34 = vpop.permute.xlu0 %114  ;;  %v133_v40 = vsel %vm128_vm4, %v866_v5, %v117_v33  ;;  %v804_v5 = vld [vmem:[%s1199_s2 + $0x40] sm:$0xff]   ;;  %s809_s2 = smov 72  }
  0x7e   :  { %v130_v39 = vsel %vm128_vm4, %v862_v4, %v115_v34  ;;  %444 = vmatpush2.bf16.msra.mxu1 %v804_v5 }
  0x7f   :  { %554 = vmatprep.subr.bf16.mxu1 %v805_v3 }
  0x80   :  { %v127_v35 = vpop.permute.xlu1 %126 }
  0x81   :  { %v125_v36 = vpop.permute.xlu0 %124  ;;  %v139_v38 = vsel %vm135_vm2, %v117_v33, %v127_v35  ;;  %v515_v33 = vshll.u32 %v1091_v12, 16 }
  0x82   :  { %v137_v37 = vsel %vm135_vm2, %v115_v34, %v125_v36 }
  0x83   :  { %742 = vmatprep.mubr.msk.bf16.mxu0 %vm236_vm3, %v137_v37 }
  0x84   :  { %274 = vmatmul.mubr.bf16.vlgmr.msra.gmra.mxu0 %v130_v39 }
  0x85   :  { %743 = vmatprep.mubr.msk.bf16.mxu0 %vm236_vm3, %v139_v38  ;;  %639 = vmatpush1.bf16.msra.mxu0 %v791_v41  ;;  %v520_v38 = vshll.u32 %v1099_v19, 16 }
  0x86   :  { %640 = vmatprep.subr.bf16.mxu0 %v805_v3 }
  0x89   :  { %641 = vmatpush1.bf16.msra.mxu0 %v792_v42  ;;  %v513_v42 = vshrl.u32 %v1091_v12, 16 }
  0x8a   :  { %642 = vmatprep.subr.bf16.mxu0 %v805_v3 }
  0x8c   :  { %282 = vmatmul.mubr.bf16.gmra.mxu0 %v133_v40 }
  0x8d   :  { %643 = vmatpush1.bf16.msra.mxu0 %v793_v43  ;;  %v517_v43 = vrot.slane %v515_v33, 1 }
  0x8e   :  { %644 = vmatprep.subr.bf16.mxu0 %v805_v3 }
  0x91   :  { %645 = vmatpush1.bf16.msra.mxu0 %v794_v44  ;;  %v533_v44 = vrot.slane %v1091_v12, 1 }
  0x92   :  { %646 = vmatprep.subr.bf16.mxu0 %v805_v3 }
  0x95   :  { %647 = vmatpush1.bf16.msra.mxu0 %v795_v45  ;;  %v534_v45 = vrot.slane %v1099_v19, 1 }
  0x96   :  { %648 = vmatprep.subr.bf16.mxu0 %v805_v3 }
  0x99   :  { %649 = vmatpush1.bf16.msra.mxu0 %v796_v46 }
  0x9a   :  { %650 = vmatprep.subr.bf16.mxu0 %v805_v3 }
  0x9d   :  { %651 = vmatpush1.bf16.msra.mxu0 %v797_v47 }
  0x9e   :  { %652 = vmatprep.subr.bf16.mxu0 %v805_v3 }
  0xa1   :  { %653 = vmatpush1.bf16.msra.mxu0 %v798_v48 }
  0xa2   :  { %658 = vmatprep.subr.bf16.mxu0 %v805_v3 }
  0xa5   :  { %659 = vmatpush2.bf16.msra.mxu0 %v411_v50  ;;  %v522_v50 = vrot.slane %v520_v38, 1 }
  0xa6   :  { %660 = vmatprep.subr.bf16.mxu0 %v805_v3 }
  0xa9   :  { %661 = vmatpush2.bf16.msra.mxu0 %v800_v51 }
  0xaa   :  { %662 = vmatprep.subr.bf16.mxu0 %v805_v3 }
  0xad   :  { %663 = vmatpush2.bf16.msra.mxu0 %v801_v52 }
  0xae   :  { %664 = vmatprep.subr.bf16.mxu0 %v805_v3 }
  0xb1   :  { %665 = vmatpush2.bf16.msra.mxu0 %v802_v53 }
  0xb2   :  { %666 = vmatprep.subr.bf16.mxu0 %v805_v3 }
  0xb5   :  { %667 = vmatpush2.bf16.msra.mxu0 %v803_v54  ;;  %v518_v54 = vor.u32 %v517_v43, %v513_v42 }
  0xb6   :  { %668 = vmatprep.subr.bf16.mxu0 %v805_v3 }
  0xb9   :  { %669 = vmatpush2.bf16.msra.mxu0 %v804_v5 }
 0x144   :  { %v275_v57 = vpop.f32.mrf.mxu0 }
 0x145   :  { %v276_v59 = vadd.f32 %v1061_v56, %v275_v57  ;;  %v535_v57 = vsel %vm120_vm1, %v533_v44, %v534_v45 }
 0x146   :  { %v277_v60 = vpop.f32.mrf.mxu0 }
 0x147   :  { %v289_v63 = vmax.f32 %v276_v59, 0.0  ;;  %v524_v59 = vshrl.u32 %v1099_v19, 16  ;;  %v523_v60 = vsel %vm98_vm0, %v518_v54, %v522_v50 }
 0x148   :  { %v278_v4 = vpop.f32.mrf.mxu0 }
 0x149   :  { %v279_v8 = vadd.f32 %v1061_v56, %v278_v4  ;;  %v292_v14 = vsel %vm84_vm6, %v289_v63, 0.0  ;;  %v526_v63 = vor.u32 %v524_v59, %v522_v50 }
 0x14a   :  { %v280_v9 = vpop.f32.mrf.mxu0 }
 0x14b   :  { %v290_v13 = vmax.f32 %v279_v8, 0.0 }
 0x14c   :  { %v283_v15 = vpop.f32.mrf.mxu0 }
 0x14d   :  { %v295_v16 = vpack.c.bf16 %v290_v13, %v292_v14  ;;  %v284_v17 = vadd.f32 %v1061_v56, %v283_v15 }
 0x14e   :  { %v285_v20 = vpop.f32.mrf.mxu0 }
 0x14f   :  { %v291_v34 = vmax.f32 %v284_v17, 0.0  ;;  %v300_v35 = vshll.u32 %v295_v16, 16  ;;  %v313_v48 = vrot.slane %v295_v16, 1  ;;  %v298_v49 = vshrl.u32 %v295_v16, 16 }
 0x150   :  { %v286_v36 = vpop.f32.mrf.mxu0 }
 0x151   :  { %v294_v37 = vsel %vm89_vm7, %v291_v34, 0.0  ;;  %v302_v41 = vrot.slane %v300_v35, 1 }
 0x152   :  { %v296_v39 = vpack.c.bf16 %v294_v37, %v294_v37  ;;  %v287_v40 = vpop.f32.mrf.mxu0 }
 0x153   :  { %v303_v53 = vor.u32 %v302_v41, %v298_v49 }
 0x154   :  { %v305_v46 = vshll.u32 %v296_v39, 16  ;;  %v314_v47 = vrot.slane %v296_v39, 1 }
 0x156   :  { %v307_v51 = vrot.slane %v305_v46, 1  ;;  %v315_v52 = vsel %vm120_vm1, %v313_v48, %v314_v47 }
 0x157   :  { %316 = vrot.lane.b32.xlu1 %v315_v52, %s808_s0 }
 0x158   :  { %v308_v55 = vsel %vm98_vm0, %v303_v53, %v307_v51 }
 0x159   :  { %309 = vrot.lane.b32.xlu0 %v308_v55, %s809_s2 }
 0x15b   :  { %536 = vrot.lane.b32.xlu1 %v535_v57, %s807_s8 }
 0x15d   :  { %527 = vrot.lane.b32.xlu0 %v523_v60, %s806_s30 }
 0x15f   :  { %538 = vrot.lane.b32.xlu1 %v534_v45, %s807_s8 }
 0x161   :  { %529 = vrot.lane.b32.xlu0 %v526_v63, %s806_s30  ;;  %s810_s30 = smov 8  }
 0x1c9   :  { %v317_v4 = vpop.permute.xlu1 %316 }
 0x1cb   :  { %v310_v5 = vpop.permute.xlu0 %309 }
 0x1cc   :  { %v324_v8 = vsel %vm322_vm8, %v310_v5, %v317_v4  ;;  %v320_v9 = vsel %vm318_vm9, %v295_v16, %v310_v5  ;;  %v759_v4 = vld [vmem:[%s1201_s4] ss:$0 sm:$0xff]  ;;  %s811_s4 = smov 120  }
 0x1cd   :  { %758 = vmatprep.mubr.msk.bf16.mxu1 %vm406_vm10, %v324_v8  ;;  %v537_v13 = vpop.permute.xlu1 %536 }
 0x1ce   :  { %446 = vmatmul.mubr.bf16.vlgmr.msra.gmra.mxu1 %v320_v9 }
 0x1cf   :  { %555 = vmatpush1.bf16.msra.mxu1 %v871_v6  ;;  %v528_v14 = vpop.permute.xlu0 %527 }
 0x1d0   :  { %556 = vmatprep.subr.bf16.mxu1 %v805_v3  ;;  %v547_v15 = vsel %vm135_vm2, %v528_v14, %v537_v13 }
 0x1d1   :  { %763 = vmatprep.mubr.msk.bf16.mxu1 %vm236_vm3, %v547_v15  ;;  %v539_v6 = vpop.permute.xlu1 %538 }
 0x1d3   :  { %557 = vmatpush1.bf16.msra.mxu1 %v876_v7  ;;  %v530_v7 = vpop.permute.xlu0 %529 }
 0x1d4   :  { %558 = vmatprep.subr.bf16.mxu1 %v805_v3 }
 0x1d7   :  { %559 = vmatpush1.bf16.msra.mxu1 %v890_v18  ;;  %v541_v18 = vsel %vm128_vm4, %v1091_v12, %v528_v14 }
 0x1d8   :  { %560 = vmatprep.subr.bf16.mxu1 %v805_v3 }
 0x1db   :  { %561 = vmatpush1.bf16.msra.mxu1 %v901_v21  ;;  %v549_v21 = vsel %vm135_vm2, %v530_v7, %v539_v6 }
 0x1dc   :  { %562 = vmatprep.subr.bf16.mxu1 %v805_v3 }
 0x1df   :  { %563 = vmatpush1.bf16.msra.mxu1 %v910_v22  ;;  %v544_v22 = vsel %vm128_vm4, %v1099_v19, %v530_v7 }
 0x1e0   :  { %564 = vmatprep.subr.bf16.mxu1 %v805_v3 }
 0x1e3   :  { %565 = vmatpush1.bf16.msra.mxu1 %v917_v23 }
 0x1e4   :  { %566 = vmatprep.subr.bf16.mxu1 %v805_v3 }
 0x1e7   :  { %567 = vmatpush1.bf16.msra.mxu1 %v924_v24 }
 0x1e8   :  { %568 = vmatprep.subr.bf16.mxu1 %v805_v3 }
 0x1eb   :  { %569 = vmatpush1.bf16.msra.mxu1 %v931_v25 }
 0x1ec   :  { %572 = vmatprep.subr.bf16.mxu1 %v805_v3 }
 0x1ef   :  { %573 = vmatpush2.bf16.msra.mxu1 %v938_v26 }
 0x1f0   :  { %574 = vmatprep.subr.bf16.mxu1 %v805_v3 }
 0x1f3   :  { %575 = vmatpush2.bf16.msra.mxu1 %v945_v27 }
 0x1f4   :  { %576 = vmatprep.subr.bf16.mxu1 %v805_v3 }
 0x1f7   :  { %577 = vmatpush2.bf16.msra.mxu1 %v952_v28 }
 0x1f8   :  { %578 = vmatprep.subr.bf16.mxu1 %v805_v3 }
 0x1fb   :  { %579 = vmatpush2.bf16.msra.mxu1 %v959_v29 }
 0x1fc   :  { %580 = vmatprep.subr.bf16.mxu1 %v805_v3 }
 0x1ff   :  { %581 = vmatpush2.bf16.msra.mxu1 %v966_v30 }
 0x200   :  { %582 = vmatprep.subr.bf16.mxu1 %v805_v3 }
 0x203   :  { %583 = vmatpush2.bf16.msra.mxu1 %v973_v31 }
 0x204   :  { %584 = vmatprep.subr.bf16.mxu1 %v805_v3 }
 0x207   :  { %585 = vmatpush2.bf16.msra.mxu1 %v980_v32 }
 0x20a   :  { %587 = vmatmul.mubr.bf16.vlgmr.msra.gmra.mxu1 %v541_v18 }
 0x20b   :  { %764 = vmatprep.mubr.msk.bf16.mxu1 %vm236_vm3, %v549_v21 }
 0x212   :  { %595 = vmatmul.mubr.bf16.gmra.mxu1 %v544_v22 }
 0x28e   :  { %v447_v23 = vpop.f32.mrf.mxu1 }
 0x28f   :  { %v457_v3 = vrot.slane %v447_v23, 6 }
 0x290   :  { %v449_v24 = vpop.f32.mrf.mxu1 }
 0x292   :  { %v450_v25 = vpop.f32.mrf.mxu1 }
 0x293   :  { %v458_v26 = vrot.slane %v450_v25, 6 }
 0x294   :  { %v452_v27 = vpop.f32.mrf.mxu1 }
 0x295   :  { %v459_v28 = vsel %vm456_vm11, %v457_v3, %v458_v26 }
 0x2ca   :  { %v588_v29 = vpop.f32.mrf.mxu1 }
 0x2cb   :  { %v589_v30 = vadd.f32 %v1061_v56, %v588_v29 }
 0x2cc   :  { %v590_v31 = vpop.f32.mrf.mxu1 }
 0x2cd   :  { %v602_v32 = vmax.f32 %v589_v30, 0.0 }
 0x2ce   :  { %v591_v12 = vpop.f32.mrf.mxu1 }
 0x2cf   :  { %v592_v16 = vadd.f32 %v1061_v56, %v591_v12  ;;  %v605_v20 = vsel %vm84_vm6, %v602_v32, 0.0 }
 0x2d0   :  { %v593_v17 = vpop.f32.mrf.mxu1 }
 0x2d1   :  { %v603_v19 = vmax.f32 %v592_v16, 0.0 }
 0x2d2   :  { %v596_v33 = vpop.f32.mrf.mxu1 }
 0x2d3   :  { %v608_v34 = vpack.c.bf16 %v603_v19, %v605_v20  ;;  %v597_v35 = vadd.f32 %v1061_v56, %v596_v33 }
 0x2d4   :  { %v598_v36 = vpop.f32.mrf.mxu1 }
 0x2d5   :  { %v604_v37 = vmax.f32 %v597_v35, 0.0  ;;  %v613_v38 = vshll.u32 %v608_v34, 16  ;;  %v626_v46 = vrot.slane %v608_v34, 1  ;;  %v611_v47 = vshrl.u32 %v608_v34, 16 }
 0x2d6   :  { %v599_v39 = vpop.f32.mrf.mxu1 }
 0x2d7   :  { %v607_v40 = vsel %vm89_vm7, %v604_v37, 0.0  ;;  %v615_v43 = vrot.slane %v613_v38, 1 }
 0x2d8   :  { %v609_v41 = vpack.c.bf16 %v607_v40, %v607_v40  ;;  %v600_v42 = vpop.f32.mrf.mxu1 }
 0x2d9   :  { %v616_v49 = vor.u32 %v615_v43, %v611_v47 }
 0x2da   :  { %v618_v44 = vshll.u32 %v609_v41, 16  ;;  %v627_v45 = vrot.slane %v609_v41, 1 }
 0x2dc   :  { %v620_v58 = vrot.slane %v618_v44, 1  ;;  %v628_v48 = vsel %vm120_vm1, %v626_v46, %v627_v45 }
 0x2dd   :  { %629 = vrot.lane.b32.xlu1 %v628_v48, %s808_s0 }
 0x2de   :  { %v621_v56 = vsel %vm98_vm0, %v616_v49, %v620_v58 }
 0x2df   :  { %622 = vrot.lane.b32.xlu0 %v621_v56, %s809_s2 }
 0x2e1   :  { %462 = vrot.lane.b32.xlu1 %v459_v28, %s810_s30 }
 0x2e3   :  { %460 = vrot.lane.b32.xlu0 %v457_v3, %s810_s30 }
 0x2e7   :  { %464 = vrot.lane.b32.xlu0 %v458_v26, %s810_s30 }
 0x34f   :  { %v630_v10 = vpop.permute.xlu1 %629 }
 0x351   :  { %v623_v50 = vpop.permute.xlu0 %622 }
 0x352   :  { %v632_v51 = vsel %vm318_vm9, %v608_v34, %v623_v50  ;;  %v635_v52 = vsel %vm322_vm8, %v623_v50, %v630_v10 }
 0x353   :  { %765 = vmatprep.mubr.msk.bf16.mxu0 %vm406_vm10, %v635_v52  ;;  %v463_v9 = vpop.permute.xlu1 %462 }
 0x354   :  { %671 = vmatmul.mubr.bf16.vlgmr.msra.gmra.mxu0 %v632_v51  ;;  %v470_v14 = vadd.f32 %v463_v9, %v851_v1 }
 0x355   :  { %v461_v5 = vpop.permute.xlu0 %460 }
 0x356   :  { %v469_v15 = vadd.f32 %v461_v5, %v846_v0 }
 0x359   :  { %v465_v8 = vpop.permute.xlu0 %464 }
 0x35a   :  { %v471_v18 = vadd.f32 %v465_v8, %v856_v2 }
 0x414   :  { %v672_v53 = vpop.f32.mrf.mxu0 }
 0x415   :  { %v681_v54 = vrot.slane %v672_v53, 6 }
 0x416   :  { %v674_v55 = vpop.f32.mrf.mxu0 }
 0x417   :  { %684 = vrot.lane.b32.xlu1 %v681_v54, %s810_s30 }
 0x418   :  { %v675_v57 = vpop.f32.mrf.mxu0 }
 0x419   :  { %v682_v59 = vrot.slane %v675_v57, 6 }
 0x41a   :  { %v677_v60 = vpop.f32.mrf.mxu0 }
 0x41b   :  { %688 = vrot.lane.b32.xlu1 %v682_v59, %s810_s30  ;;  %v683_v63 = vsel %vm456_vm11, %v681_v54, %v682_v59 }
 0x41c   :  { %686 = vrot.lane.b32.xlu0 %v683_v63, %s810_s30 }
 0x420   :  { %477 = vrot.lane.b32.xlu0 %v759_v4, %s810_s30 }
 0x489   :  { %v685_v6 = vpop.permute.xlu1 %684 }
 0x48a   :  { %v693_v3 = vadd.f32 %v1069_v61, %v685_v6 }
 0x48d   :  { %v689_v27 = vpop.permute.xlu1 %688 }
 0x48e   :  { %v687_v13 = vpop.permute.xlu0 %686  ;;  %v695_v29 = vadd.f32 %v1087_v11, %v689_v27 }
 0x48f   :  { %v694_v26 = vadd.f32 %v1074_v62, %v687_v13 }
 0x492   :  { %v478_v7 = vpop.permute.xlu0 %477 }
 0x493   :  { %v481_v21 = vadd.f32 %v478_v7, %v470_v14  ;;  %v480_v22 = vadd.f32 %v478_v7, %v469_v15  ;;  %v482_v25 = vadd.f32 %v478_v7, %v471_v18  ;;  %v697_v28 = vadd.f32 %v694_v26, %v478_v7 }
 0x494   :  { %v696_v0 = vadd.f32 %v693_v3, %v478_v7  ;;  %v698_v31 = vadd.f32 %v695_v29, %v478_v7 }
 0x495   :  { %v484_v23 = vmax.f32 %v481_v21, 0.0  ;;  %v483_v24 = vmax.f32 %v480_v22, 0.0  ;;  %v485_v1 = vmax.f32 %v482_v25, 0.0  ;;  %v700_v2 = vmax.f32 %v697_v28, 0.0 }
 0x496   :  { %v699_v30 = vmax.f32 %v696_v0, 0.0  ;;  %v701_v61 = vmax.f32 %v698_v31, 0.0 }
 0x497   :  { %490 = vrot.lane.b32.xlu0 %v484_v23, %s811_s4  ;;  %488 = vrot.lane.b32.xlu1 %v483_v24, %s811_s4 }
 0x49b   :  { %497 = vrot.lane.b32.xlu0 %v485_v1, %s812_s19  ;;  %495 = vrot.lane.b32.xlu1 %v484_v23, %s812_s19 }
 0x49f   :  { %706 = vrot.lane.b32.xlu0 %v700_v2, %s811_s4  ;;  %704 = vrot.lane.b32.xlu1 %v699_v30, %s811_s4 }
 0x4a3   :  { %713 = vrot.lane.b32.xlu0 %v701_v61, %s812_s19  ;;  %711 = vrot.lane.b32.xlu1 %v700_v2, %s812_s19 }
 0x509   :  { %v491_v62 = vpop.permute.xlu0 %490  ;;  %v489_v32 = vpop.permute.xlu1 %488 }
 0x50d   :  { %v498_v12 = vpop.permute.xlu0 %497  ;;  %v496_v16 = vpop.permute.xlu1 %495 }
 0x50e   :  { %v503_v17 = vsel %vm501_vm12, %v491_v62, %v498_v12  ;;  %v502_v19 = vsel %vm501_vm12, %v489_v32, %v496_v16 }
 0x50f   :  { %505 = vst [vmem:[%s1202_s5 + $0x6] sm:$0x3] %v503_v17  ;;  %504 = vst [vmem:[%s1202_s5 - $0x2] sm:$0xfc] %v502_v19 }
 0x511   :  { %v707_v11 = vpop.permute.xlu0 %706  ;;  %v705_v20 = vpop.permute.xlu1 %704 }
 0x515   :  { %v714_v33 = vpop.permute.xlu0 %713  ;;  %v712_v34 = vpop.permute.xlu1 %711 }
 0x516   :  { %v718_v35 = vsel %vm501_vm12, %v707_v11, %v714_v33  ;;  %v717_v36 = vsel %vm501_vm12, %v705_v20, %v712_v34 }
 0x517   :  { %767 = vst [vmem:[%s1202_s5 + $0xe] sm:$0x3] %v718_v35  ;;  %766 = vst [vmem:[%s1202_s5 + $0x6] sm:$0xfc] %v717_v36 }

</bundles_post_ra>
